<compile_context>
chip_gen: v7x
topology: tpu7x:2x2x1
jax: 0.10.0
libtpu: 0.0.40
codegen_flags: <defaults>
</compile_context>

<pallas_src>
import functools

import jax
import jax.numpy as jnp
from jax import lax
from jax.experimental import pallas as pl
from jax.experimental.pallas import tpu as pltpu


# ---------------- synthetic config / args (fields the module reads) ----------
class Config:
    ENT_DIM = 32
    HIDDEN = 64          # hidden width of each ActionNet MLP
    N_QUANT_LM = 8
    ATTACK = True
    SHARE = True
    NOISE = False        # TODO(synk): noisy-layer (reset_noise) path not modeled
    PUNISHMENT = 0.5


class Args:
    nRealm = 1


# ---------------- Pallas kernel ----------------------------------------------
def _fused_lawmaker_kernel(flat_ref, w1_ref, bias_ref, w2_ref, out_ref, *, k):
    """One fused 2-layer MLP covering every action head.

    flat: (TS, E) f32      w1: (E, K=heads*H) bf16
    bias: (1, K+OW) f32    w2: (K, OW=128)    bf16     out: (TS, OW) f32
    out lanes [0:88]  -> concatenated per-head quantile logits (A*Q each)
    out lanes [88:99] -> per-action quantile means * PUNISHMENT
    out lanes [99:128]-> zero padding (zero w2 columns / zero bias)
    """
    x = flat_ref[...].astype(jnp.bfloat16)
    # bf16 operands, f32 accumulation (MXU-native on v5e/v6e/v7x).
    h = jnp.dot(x, w1_ref[...], preferred_element_type=jnp.float32)
    h = jnp.maximum(h + bias_ref[:, :k], 0.0)                 # f32 VPU math
    y = jnp.dot(h.astype(jnp.bfloat16), w2_ref[...],
                preferred_element_type=jnp.float32)
    out_ref[...] = y + bias_ref[:, k:]


def fused_forward(flat, fused, *, ts_max=512):
    s, e = flat.shape
    k = fused["w1"].shape[1]
    out_w = fused["w2"].shape[1]

    # Tile S: <=512 rows per step (multiple of 8 requirement satisfied either
    # by divisibility or by using the full dim when S is small).
    ts = s if s <= ts_max else ts_max
    grid = (pl.cdiv(s, ts),)

    kernel = functools.partial(_fused_lawmaker_kernel, k=k)

    return pl.pallas_call(
        kernel,
        grid=grid,
        in_specs=[
            pl.BlockSpec((ts, e), lambda i: (i, 0)),           # streamed rows
            pl.BlockSpec((e, k), lambda i: (0, 0)),            # resident weights
            pl.BlockSpec((1, k + out_w), lambda i: (0, 0)),    # resident biases
            pl.BlockSpec((k, out_w), lambda i: (0, 0)),        # resident weights
        ],
        out_specs=pl.BlockSpec((ts, out_w), lambda i: (i, 0)),
        out_shape=jax.ShapeDtypeStruct((s, out_w), jnp.float32),
        compiler_params=pltpu.CompilerParams(
            dimension_semantics=("parallel",)),                # 2 TCs on v7x
    )(flat, fused["w1"], fused["bias"], fused["w2"])


# ---------------- parameter setup (deterministic, in-script) -----------------
def init_action_net(key, ent_dim, hidden, out_dim, n_quant):
    k1, k2, k3, k4 = jax.random.split(key, 4)
    w1 = jax.random.normal(k1, (ent_dim, hidden), jnp.float32) * 0.1
    b1 = jax.random.normal(k2, (1, hidden), jnp.float32) * 0.01
    w2 = jax.random.normal(k3, (hidden, out_dim * n_quant), jnp.float32) * 0.1
    b2 = jax.random.normal(k4, (1, out_dim * n_quant), jnp.float32) * 0.01
    return dict(w1=w1, b1=b1, w2=w2, b2=b2)


def build_fused_params(head_params, heads, hidden, n_quant, punishment):
    """Concatenate per-head weights into one MLP + punishment columns.

    Weights are cast to bf16 ONCE here (not per call); biases stay f32.
    """
    names = [n for n, _ in heads]
    aq_total = sum(a * n_quant for _, a in heads)
    a_total = sum(a for _, a in heads)
    out_w = ((aq_total + a_total + 127) // 128) * 128   # lane-dense output width

    w1 = jnp.concatenate([head_params[n]["w1"] for n in names], axis=1)
    b1 = jnp.concatenate([head_params[n]["b1"] for n in names], axis=1)

    k = len(heads) * hidden
    w2 = jnp.zeros((k, out_w), jnp.float32)
    b2 = jnp.zeros((1, out_w), jnp.float32)

    layout = []
    row, q_off, p_off = 0, 0, aq_total
    for name, a in heads:
        p = head_params[name]
        aq = a * n_quant
        w2 = w2.at[row:row + hidden, q_off:q_off + aq].set(p["w2"])
        b2 = b2.at[:, q_off:q_off + aq].set(p["b2"])
        # Fold (mean over quantiles) * PUNISHMENT into extra linear columns.
        w2_mean = p["w2"].reshape(hidden, a, n_quant).mean(axis=2) * punishment
        b2_mean = p["b2"].reshape(1, a, n_quant).mean(axis=2) * punishment
        w2 = w2.at[row:row + hidden, p_off:p_off + a].set(w2_mean)
        b2 = b2.at[:, p_off:p_off + a].set(b2_mean)
        layout.append((name, a, q_off, p_off))
        row += hidden
        q_off += aq
        p_off += a

    fused = dict(
        w1=w1.astype(jnp.bfloat16),
        w2=w2.astype(jnp.bfloat16),
        bias=jnp.concatenate([b1, b2], axis=1),   # (1, K + out_w), f32
    )
    return fused, tuple(layout)


# ---------------- Lawmaker ----------------------------------------------------
class LawmakerPallas:
    def __init__(self, args, config, key):
        self.config = config
        heads = [("move", 5)]
        if config.ATTACK:
            heads.append(("attack", 2))
        if config.SHARE:
            heads.append(("shareWater", 2))
            heads.append(("shareFood", 2))
        self.heads = dict(heads)

        # per-head f32 params kept for the pure-JAX reference check
        self.params = {}
        keys = jax.random.split(key, len(heads))
        for k, (name, out_dim) in zip(keys, heads):
            self.params[name] = init_action_net(
                k, config.ENT_DIM, config.HIDDEN, out_dim, config.N_QUANT_LM)

        self.fused, layout = build_fused_params(
            self.params, heads, config.HIDDEN, config.N_QUANT_LM,
            config.PUNISHMENT)

        n_quant = config.N_QUANT_LM

        def _forward(flat, fused):
            slab = fused_forward(flat, fused)          # (S, 128) lane-dense
            outputs, punishments = {}, {}
            for name, a, q_off, p_off in layout:
                outputs[name] = slab[:, q_off:q_off + a * n_quant].reshape(
                    flat.shape[0], a, n_quant)
                punishments[name] = slab[:, p_off:p_off + a]
            return outputs, punishments

        # single jit: one dispatch for the whole Lawmaker forward
        self._forward = jax.jit(_forward)

    def __call__(self, flat, ents=None):
        # `ents`, `device`, `.to('cpu')`, `.detach()` have no numeric effect.
        # Callers should aggregate agents across realms/timesteps into one
        # `flat` before calling (grow S); the kernel streams S in 512-row tiles.
        return self._forward(flat, self.fused)


# ---------------- reference (pure JAX) for a correctness check ---------------
def _ref_head(flat, p, out_dim, n_quant, punishment):
    """Reference at matching (bf16-operand / f32-accumulate) precision."""
    w1 = p["w1"].astype(jnp.bfloat16)
    w2 = p["w2"].astype(jnp.bfloat16)
    h = jnp.dot(flat.astype(jnp.bfloat16), w1,
                preferred_element_type=jnp.float32) + p["b1"]
    h = jnp.maximum(h, 0.0)
    y = (jnp.dot(h.astype(jnp.bfloat16), w2,
                 preferred_element_type=jnp.float32)
         + p["b2"]).reshape(flat.shape[0], out_dim, n_quant)
    return y, y.mean(axis=2) * punishment


if __name__ == "__main__":
    cfg, args = Config(), Args()
    key = jax.random.PRNGKey(0)
    k_param, k_flat = jax.random.split(key)

    batch = 64   # small demo batch; production should batch agents to grow S
    flat = jax.random.normal(k_flat, (batch, cfg.ENT_DIM), jnp.float32)

    lawmaker = LawmakerPallas(args, cfg, k_param)
    outputs, punishments = lawmaker(flat)
    jax.block_until_ready((outputs, punishments))

    # verify against a plain-JAX reference (same bf16/f32-acc precision;
    # punishment lanes use mean-folded bf16 weights -> slightly looser tol)
    ok = True
    for name, out_dim in lawmaker.heads.items():
        ro, rp = _ref_head(flat, lawmaker.params[name], out_dim,
                           cfg.N_QUANT_LM, cfg.PUNISHMENT)
        ok &= bool(jnp.allclose(outputs[name], ro, atol=2e-3, rtol=2e-2))
        ok &= bool(jnp.allclose(punishments[name], rp, atol=2e-3, rtol=2e-2))
    assert ok, "mismatch vs reference"

    print("KERNEL_OK")
</pallas_src>

<mosaic_0001>
module attributes {stable_mosaic.version = 11 : i64} {
  func.func @_fused_lawmaker_kernel(%arg0: i32, %arg1: memref<64x32xf32, #tpu.memory_space<vmem>>, %arg2: memref<32x256xbf16, #tpu.memory_space<vmem>>, %arg3: memref<1x384xf32, #tpu.memory_space<vmem>>, %arg4: memref<256x128xbf16, #tpu.memory_space<vmem>>, %arg5: memref<64x128xf32, #tpu.memory_space<vmem>>) attributes {dimension_semantics = [#tpu.dimension_semantics<parallel>], iteration_bounds = array<i64: 1>, scalar_prefetch = 0 : i64, scratch_operands = 0 : i64, tpu.core_type = #tpu.core_type<tc>, window_params = [{transform_indices = @transform_0, window_bounds = array<i64: 64, 32>}, {pipeline_mode = #tpu.pipeline_mode<synchronous>, transform_indices = @transform_1, window_bounds = array<i64: 32, 256>}, {pipeline_mode = #tpu.pipeline_mode<synchronous>, transform_indices = @transform_2, window_bounds = array<i64: 1, 384>}, {pipeline_mode = #tpu.pipeline_mode<synchronous>, transform_indices = @transform_3, window_bounds = array<i64: 256, 128>}, {transform_indices = @transform_4, window_bounds = array<i64: 64, 128>}]} {
    %c0 = arith.constant 0 : index
    %c0_0 = arith.constant 0 : index
    %0 = vector.load %arg1[%c0, %c0_0] : memref<64x32xf32, #tpu.memory_space<vmem>>, vector<64x32xf32>
    %1 = arith.truncf %0 : vector<64x32xf32> to vector<64x32xbf16>
    %c0_1 = arith.constant 0 : index
    %c0_2 = arith.constant 0 : index
    %2 = vector.load %arg2[%c0_1, %c0_2] : memref<32x256xbf16, #tpu.memory_space<vmem>>, vector<32x256xbf16>
    %cst = arith.constant dense<0.000000e+00> : vector<64x256xf32>
    %3 = tpu.matmul %1, %2, %cst {dimension_numbers = #tpu.dot_dimension_numbers<[1], [0], [0], [1], [0, 0, 1, 1], [], []>} : vector<64x32xbf16>, vector<32x256xbf16>, vector<64x256xf32> -> vector<64x256xf32>
    %c0_3 = arith.constant 0 : index
    %c0_4 = arith.constant 0 : index
    %4 = vector.load %arg3[%c0_3, %c0_4] : memref<1x384xf32, #tpu.memory_space<vmem>>, vector<1x256xf32>
    %5 = vector.broadcast %4 : vector<1x256xf32> to vector<64x256xf32>
    %6 = arith.addf %3, %5 : vector<64x256xf32>
    %cst_5 = arith.constant 0.000000e+00 : f32
    %7 = vector.broadcast %cst_5 : f32 to vector<64x256xf32>
    %8 = arith.maximumf %6, %7 : vector<64x256xf32>
    %9 = arith.truncf %8 : vector<64x256xf32> to vector<64x256xbf16>
    %c0_6 = arith.constant 0 : index
    %c0_7 = arith.constant 0 : index
    %10 = vector.load %arg4[%c0_6, %c0_7] : memref<256x128xbf16, #tpu.memory_space<vmem>>, vector<256x128xbf16>
    %cst_8 = arith.constant dense<0.000000e+00> : vector<64x128xf32>
    %11 = tpu.matmul %9, %10, %cst_8 {dimension_numbers = #tpu.dot_dimension_numbers<[1], [0], [0], [1], [0, 0, 1, 1], [], []>} : vector<64x256xbf16>, vector<256x128xbf16>, vector<64x128xf32> -> vector<64x128xf32>
    %c0_9 = arith.constant 0 : index
    %c256 = arith.constant 256 : index
    %12 = vector.load %arg3[%c0_9, %c256] : memref<1x384xf32, #tpu.memory_space<vmem>>, vector<1x128xf32>
    %13 = vector.broadcast %12 : vector<1x128xf32> to vector<64x128xf32>
    %14 = arith.addf %11, %13 : vector<64x128xf32>
    %c0_10 = arith.constant 0 : index
    %c0_11 = arith.constant 0 : index
    %15 = vector.load %arg5[%c0_10, %c0_11] : memref<64x128xf32, #tpu.memory_space<vmem>>, vector<64x128xf32>
    tpu.vector_store %arg5[%c0_10, %c0_11], %14 {strides = array<i32>} : memref<64x128xf32, #tpu.memory_space<vmem>>, vector<64x128xf32>,
    return
  }
  func.func @transform_0(%arg0: i32) -> (i32, i32) {
    %c0_i32 = arith.constant 0 : i32
    %c0_i32_0 = arith.constant 0 : i32
    return %arg0, %c0_i32 : i32, i32
  }
  func.func @transform_1(%arg0: i32) -> (i32, i32) {
    %c0_i32 = arith.constant 0 : i32
    %c0_i32_0 = arith.constant 0 : i32
    %c0_i32_1 = arith.constant 0 : i32
    return %c0_i32, %c0_i32_0 : i32, i32
  }
  func.func @transform_2(%arg0: i32) -> (i32, i32) {
    %c0_i32 = arith.constant 0 : i32
    %c0_i32_0 = arith.constant 0 : i32
    %c0_i32_1 = arith.constant 0 : i32
    return %c0_i32, %c0_i32_0 : i32, i32
  }
  func.func @transform_3(%arg0: i32) -> (i32, i32) {
    %c0_i32 = arith.constant 0 : i32
    %c0_i32_0 = arith.constant 0 : i32
    %c0_i32_1 = arith.constant 0 : i32
    return %c0_i32, %c0_i32_0 : i32, i32
  }
  func.func @transform_4(%arg0: i32) -> (i32, i32) {
    %c0_i32 = arith.constant 0 : i32
    %c0_i32_0 = arith.constant 0 : i32
    return %arg0, %c0_i32 : i32, i32
  }
}

</mosaic_0001>

<bundles_post_ra>
// kernel: _forward.1
= control target key start
LH: loop header
LB: loop body
LE: loop exit
PB: predicated region body
PF: predicated region fallthrough
CT: control target
= control target key end

     0   :  { %9 = vsyncpa [#allocation3], 0  ;;  %s534_s15 = smov [#allocation2]   ;;  %s645_s0 = inlined_call_operand.vmem [shape: f32[64,32], index: 0, kind: input, shape index: {}]   ;;  %s646_s1 = inlined_call_operand.vmem [shape: bf16[32,256], index: 1, kind: input, shape index: {}]   ;;  %s647_s2 = inlined_call_operand.vmem [shape: f32[1,384], index: 2, kind: input, shape index: {}]   ;;  %s648_s3 = inlined_call_operand.hbm [shape: bf16[256,128], index: 3, kind: input, shape index: {}]   ;;  %s649_s4 = inlined_call_operand.vmem [shape: f32[64,128], index: 4, kind: output, shape index: {}]  }
   0x1   :  { %s21_s16 = sshll.u32 %s534_s15, 4  ;;  %s510_s19 = scalar_lea.hbm %s648_s3, 2048  ;;  %s22_s16 = int_to_ptr.vmem [resolvable:$true] %s21_s16 }
   0x2   :  { %p511_p0 = scmp.ne.s32.totalorder %s648_s3, %s510_s19  ;;  %p514_p1 = scmp.lt.u32.totalorder %s510_s19, %s648_s3 }
   0x4   :  { %p516_p2 = pnand %p514_p1, %p511_p0 }
   0x6   :  { %519 = shalt.err (!%p516_p2)
}
   0x7   :  { %s520_s24 = scalar_lea.vmem %s22_s16, 2048  ;;  %p525_p4 = scmp.lt.s32.totalorder %s22_s16, %s22_s16 }
   0x8   :  { %p521_p3 = scmp.ne.s32.totalorder %s22_s16, %s520_s24  ;;  %p526_p5 = scmp.lt.s32.totalorder %s520_s24, %s520_s24 }
   0xa   :  { %p527_p6 = por %p526_p5, %p525_p4 }
   0xc   :  { %p528_p7 = pnand %p527_p6, %p521_p3 }
   0xe   :  { %531 = shalt.err (!%p528_p7)
}
   0xf   :  { %s535_s25 = smov 64   ;;  %s536_s26 = smov 4  }
  0x10   :  { %27 = dma.hbm_to_vmem [thread:$0]  %s648_s3, 2048, %s22_s16, [#allocation3], %s535_s25, %s535_s25, %s536_s26  }
  0x11   :  { %532 = dma.done.wait [#allocation3], 2048  }
  0x12   :  { %533 = vsyncadd [#allocation3], 4294965248  ;;  %v537_v0 = vmov 0   ;;  %v488_v1 = vld [vmem:[%s646_s1 + $0x4] ss:$8 sps:$4 sm:$0xff]   ;;  %vm80_vm0 = vcmask 261120   ;;  %v50_v33 = vlaneseq }
  0x13   :  { %125 = vmatprep.mubr.bf16.mxu0 %v537_v0  ;;  %v490_v2 = vld [vmem:[%s646_s1] ss:$8 sps:$4 sm:$0xff]   ;;  %93 = vmatprep.subr.bf16.mxu0 %v488_v1  ;;  %v491_v3 = vld [vmem:[%s646_s1 + $0x14] ss:$8 sps:$4 sm:$0xff]   ;;  %v493_v4 = vld [vmem:[%s646_s1 + $0x10] ss:$8 sps:$4 sm:$0xff]  }
  0x14   :  { %94 = vmatpush1.bf16.msra.mxu0 %v490_v2  ;;  %v32_v5 = vld [vmem:[%s645_s0] sm:$0xff]  ;;  %v33_v6 = vld [vmem:[%s645_s0 + $0x8] sm:$0xff]  ;;  %v34_v11 = vld [vmem:[%s645_s0 + $0x10] sm:$0xff]  ;;  %v51_v34 = vshrl.u32 %v50_v33, 7 }
  0x15   :  { %95 = vmatprep.subr.bf16.mxu0 %v491_v3  ;;  %v40_v7 = vpack.c.bf16 %v33_v6, %v32_v5  ;;  %v494_v8 = vld [vmem:[#allocation2 + $0x40] sm:$0xff]   ;;  %v496_v10 = vld [vmem:[#allocation2 + $0x48] sm:$0xff]   ;;  %v35_v12 = vld [vmem:[%s645_s0 + $0x18] sm:$0xff] }
  0x16   :  { %v495_v9 = vld [vmem:[#allocation2] sm:$0xff]   ;;  %468 = vmatprep.subr.bf16.mxu1 %v494_v8  ;;  %v497_v13 = vld [vmem:[#allocation2 + $0x8] sm:$0xff]   ;;  %v498_v14 = vld [vmem:[#allocation2 + $0x50] sm:$0xff]   ;;  %v41_v15 = vpack.c.bf16 %v35_v12, %v34_v11  ;;  %v52_v35 = vsub.s32 0, %v51_v34  ;;  %v56_v37 = vsub.s32 1, %v51_v34 }
  0x17   :  { %476 = vmatpush3.bf16.msra.mxu1 %v495_v9  ;;  %v499_v16 = vld [vmem:[#allocation2 + $0x10] sm:$0xff]   ;;  %v500_v17 = vld [vmem:[#allocation2 + $0x58] sm:$0xff]   ;;  %v36_v18 = vld [vmem:[%s645_s0 + $0x20] sm:$0xff] }
  0x18   :  { %96 = vmatpush1.bf16.msra.mxu0 %v493_v4  ;;  %469 = vmatprep.subr.bf16.mxu1 %v496_v10  ;;  %v37_v19 = vld [vmem:[%s645_s0 + $0x28] sm:$0xff]  ;;  %v501_v20 = vld [vmem:[#allocation2 + $0x18] sm:$0xff]   ;;  %v502_v21 = vld [vmem:[#allocation2 + $0x60] sm:$0xff]  }
  0x19   :  { %428 = vmatprep.subr.bf16.mxu0 %v494_v8  ;;  %v42_v22 = vpack.c.bf16 %v37_v19, %v36_v18  ;;  %v503_v23 = vld [vmem:[#allocation2 + $0x20] sm:$0xff]   ;;  %v504_v24 = vld [vmem:[#allocation2 + $0x68] sm:$0xff]   ;;  %v38_v25 = vld [vmem:[%s645_s0 + $0x30] sm:$0xff] }
  0x1a   :  { %v39_v26 = vld [vmem:[%s645_s0 + $0x38] sm:$0xff]  ;;  %v505_v28 = vld [vmem:[#allocation2 + $0x28] sm:$0xff]   ;;  %v506_v29 = vld [vmem:[#allocation2 + $0x70] sm:$0xff]  }
  0x1b   :  { %407 = vmatmul.mubr.msk.bf16.vlgmr.msra.gmra.mrb[0].mxu0 %vm80_vm0, %v40_v7  ;;  %477 = vmatpush3.bf16.msra.mxu1 %v497_v13  ;;  %v43_v27 = vpack.c.bf16 %v39_v26, %v38_v25  ;;  %v507_v30 = vld [vmem:[#allocation2 + $0x30] sm:$0xff]   ;;  %v508_v31 = vld [vmem:[#allocation2 + $0x78] sm:$0xff]   ;;  %v48_v36 = vld [vmem:[%s647_s2] sm:$0x3] }
  0x1c   :  { %135 = vmatprep.mubr.bf16.mxu0 %v537_v0  ;;  %429 = vmatpush3.bf16.msra.mxu0 %v495_v9  ;;  %v509_v32 = vld [vmem:[#allocation2 + $0x38] sm:$0xff]   ;;  %v53_v38 = vrot.slane %v48_v36, %v52_v35  ;;  %v57_v39 = vrot.slane %v48_v36, %v56_v37  ;;  %v411_v33 = vld [vmem:[%s647_s2 + $0x2] ss:$0 sm:$0xff] }
  0x1d   :  { %430 = vmatprep.subr.bf16.mxu0 %v496_v10  ;;  %470 = vmatprep.subr.bf16.mxu1 %v498_v14 }
  0x1f   :  { %478 = vmatpush3.bf16.msra.mxu1 %v499_v16 }
  0x20   :  { %431 = vmatpush3.bf16.msra.mxu0 %v497_v13  ;;  %471 = vmatprep.subr.bf16.mxu1 %v500_v17 }
  0x21   :  { %432 = vmatprep.subr.bf16.mxu0 %v498_v14 }
  0x23   :  { %408 = vmatmul.mubr.msk.bf16.gmra.mrb[4].mxu0 %vm80_vm0, %v41_v15  ;;  %479 = vmatpush3.bf16.msra.mxu1 %v501_v20 }
  0x24   :  { %145 = vmatprep.mubr.bf16.mxu0 %v537_v0  ;;  %433 = vmatpush3.bf16.msra.mxu0 %v499_v16 }
  0x25   :  { %434 = vmatprep.subr.bf16.mxu0 %v500_v17  ;;  %472 = vmatprep.subr.bf16.mxu1 %v502_v21 }
  0x27   :  { %480 = vmatpush3.bf16.msra.mxu1 %v503_v23 }
  0x28   :  { %435 = vmatpush3.bf16.msra.mxu0 %v501_v20  ;;  %473 = vmatprep.subr.bf16.mxu1 %v504_v24 }
  0x29   :  { %436 = vmatprep.subr.bf16.mxu0 %v502_v21 }
  0x2b   :  { %409 = vmatmul.mubr.msk.bf16.gmra.mrb[8].mxu0 %vm80_vm0, %v42_v22  ;;  %481 = vmatpush3.bf16.msra.mxu1 %v505_v28 }
  0x2c   :  { %155 = vmatprep.mubr.bf16.mxu0 %v537_v0  ;;  %437 = vmatpush3.bf16.msra.mxu0 %v503_v23 }
  0x2d   :  { %438 = vmatprep.subr.bf16.mxu0 %v504_v24  ;;  %474 = vmatprep.subr.bf16.mxu1 %v506_v29 }
  0x2f   :  { %482 = vmatpush3.bf16.msra.mxu1 %v507_v30 }
  0x30   :  { %439 = vmatpush3.bf16.msra.mxu0 %v505_v28  ;;  %475 = vmatprep.subr.bf16.mxu1 %v508_v31 }
  0x31   :  { %440 = vmatprep.subr.bf16.mxu0 %v506_v29 }
  0x33   :  { %410 = vmatmul.mubr.msk.bf16.gmra.mrb[12].mxu0 %vm80_vm0, %v43_v27  ;;  %483 = vmatpush3.bf16.msra.mxu1 %v509_v32 }
  0x34   :  { %441 = vmatpush3.bf16.msra.mxu0 %v507_v30 }
  0x35   :  { %442 = vmatprep.subr.bf16.mxu0 %v508_v31 }
  0x38   :  { %443 = vmatpush3.bf16.msra.mxu0 %v509_v32 }
  0xee   :  { %v127_v40 = vpop.f32.mrb[0].mxu0 }
  0xef   :  { %v128_v41 = vadd.f32 %v127_v40, %v53_v38  ;;  %v129_v42 = vpop.f32.mrb[1].mxu0 }
  0xf0   :  { %v130_v43 = vadd.f32 %v129_v42, %v57_v39  ;;  %v131_v44 = vpop.f32.mrb[2].mxu0 }
  0xf1   :  { %v132_v45 = vadd.f32 %v131_v44, %v53_v38  ;;  %v133_v46 = vpop.f32.mrb[3].mxu0  ;;  %v166_v48 = vmax.f32 %v128_v41, 0.0 }
  0xf2   :  { %v134_v47 = vadd.f32 %v133_v46, %v57_v39  ;;  %v167_v50 = vmax.f32 %v130_v43, 0.0 }
  0xf3   :  { %v168_v49 = vmax.f32 %v132_v45, 0.0 }
  0xf4   :  { %v169_v51 = vmax.f32 %v134_v47, 0.0 }
  0xf5   :  { %v182_v52 = vpack.c.bf16 %v168_v49, %v166_v48 }
  0xf6   :  { %v183_v53 = vpack.c.bf16 %v169_v51, %v167_v50  ;;  %v137_v54 = vpop.f32.mrb[4].mxu0 }
  0xf7   :  { %v138_v55 = vadd.f32 %v137_v54, %v53_v38  ;;  %v139_v56 = vpop.f32.mrb[5].mxu0 }
  0xf8   :  { %v140_v57 = vadd.f32 %v139_v56, %v57_v39  ;;  %v141_v58 = vpop.f32.mrb[6].mxu0  ;;  %357 = vmatprep.mubr.bf16.mxu0 %v183_v53 }
  0xf9   :  { %v142_v59 = vadd.f32 %v141_v58, %v53_v38  ;;  %v143_v60 = vpop.f32.mrb[7].mxu0  ;;  %358 = vmatmul.mubr.bf16.vlgmr.msra.gmra.mrb[16].mxu0 %v182_v52  ;;  %v170_v62 = vmax.f32 %v138_v55, 0.0 }
  0xfa   :  { %v144_v61 = vadd.f32 %v143_v60, %v57_v39  ;;  %v171_v0 = vmax.f32 %v140_v57, 0.0 }
  0xfb   :  { %v172_v63 = vmax.f32 %v142_v59, 0.0 }
  0xfc   :  { %v173_v1 = vmax.f32 %v144_v61, 0.0 }
  0xfd   :  { %v184_v2 = vpack.c.bf16 %v172_v63, %v170_v62 }
  0xfe   :  { %v147_v3 = vpop.f32.mrb[8].mxu0  ;;  %v185_v4 = vpack.c.bf16 %v173_v1, %v171_v0 }
  0xff   :  { %v148_v5 = vadd.f32 %v147_v3, %v53_v38  ;;  %v149_v6 = vpop.f32.mrb[9].mxu0 }
 0x100   :  { %v150_v7 = vadd.f32 %v149_v6, %v57_v39  ;;  %v151_v8 = vpop.f32.mrb[10].mxu0  ;;  %365 = vmatprep.mubr.bf16.mxu1 %v185_v4 }
 0x101   :  { %v152_v9 = vadd.f32 %v151_v8, %v53_v38  ;;  %v153_v10 = vpop.f32.mrb[11].mxu0  ;;  %366 = vmatmul.mubr.bf16.vlgmr.msra.gmra.mrb[0].mxu1 %v184_v2  ;;  %v174_v12 = vmax.f32 %v148_v5, 0.0 }
 0x102   :  { %v154_v11 = vadd.f32 %v153_v10, %v57_v39  ;;  %v175_v14 = vmax.f32 %v150_v7, 0.0 }
 0x103   :  { %v176_v13 = vmax.f32 %v152_v9, 0.0 }
 0x104   :  { %v177_v15 = vmax.f32 %v154_v11, 0.0 }
 0x105   :  { %v186_v16 = vpack.c.bf16 %v176_v13, %v174_v12 }
 0x106   :  { %v187_v17 = vpack.c.bf16 %v177_v15, %v175_v14  ;;  %v157_v18 = vpop.f32.mrb[12].mxu0 }
 0x107   :  { %v158_v19 = vadd.f32 %v157_v18, %v53_v38  ;;  %v159_v20 = vpop.f32.mrb[13].mxu0 }
 0x108   :  { %v160_v21 = vadd.f32 %v159_v20, %v57_v39  ;;  %v161_v22 = vpop.f32.mrb[14].mxu0  ;;  %373 = vmatprep.mubr.bf16.mxu1 %v187_v17 }
 0x109   :  { %v162_v23 = vadd.f32 %v161_v22, %v53_v38  ;;  %v163_v24 = vpop.f32.mrb[15].mxu0  ;;  %374 = vmatmul.mubr.bf16.gmra.mrb[4].mxu1 %v186_v16  ;;  %v178_v26 = vmax.f32 %v158_v19, 0.0 }
 0x10a   :  { %v164_v25 = vadd.f32 %v163_v24, %v57_v39  ;;  %v179_v28 = vmax.f32 %v160_v21, 0.0 }
 0x10b   :  { %v180_v27 = vmax.f32 %v162_v23, 0.0 }
 0x10c   :  { %v181_v29 = vmax.f32 %v164_v25, 0.0 }
 0x10d   :  { %v188_v30 = vpack.c.bf16 %v180_v27, %v178_v26 }
 0x10e   :  { %v189_v31 = vpack.c.bf16 %v181_v29, %v179_v28 }
 0x110   :  { %381 = vmatprep.mubr.bf16.mxu1 %v189_v31 }
 0x111   :  { %382 = vmatmul.mubr.bf16.gmra.mrb[8].mxu1 %v188_v30 }
 0x1cc   :  { %v444_v32 = vpop.f32.mrb[16].mxu0 }
 0x1cd   :  { %v445_v34 = vpop.f32.mrb[17].mxu0 }
 0x1ce   :  { %v446_v35 = vadd.f32 %v445_v34, %v444_v32  ;;  %v447_v36 = vpop.f32.mrb[18].mxu0 }
 0x1cf   :  { %v448_v37 = vpop.f32.mrb[19].mxu0 }
 0x1d0   :  { %v360_v38 = vadd.f32 %v446_v35, %v411_v33  ;;  %v449_v40 = vadd.f32 %v448_v37, %v447_v36 }
 0x1d2   :  { %390 = vst [vmem:[%s649_s4] sm:$0xff] %v360_v38  ;;  %v363_v39 = vadd.f32 %v449_v40, %v411_v33 }
 0x1d4   :  { %391 = vst [vmem:[%s649_s4 + $0x8] sm:$0xff] %v363_v39  ;;  %v450_v41 = vpop.f32.mrb[0].mxu1 }
 0x1d5   :  { %v451_v42 = vpop.f32.mrb[1].mxu1 }
 0x1d6   :  { %v452_v43 = vadd.f32 %v451_v42, %v450_v41  ;;  %v453_v44 = vpop.f32.mrb[2].mxu1 }
 0x1d7   :  { %v454_v45 = vpop.f32.mrb[3].mxu1 }
 0x1d8   :  { %v368_v46 = vadd.f32 %v452_v43, %v411_v33  ;;  %v455_v47 = vadd.f32 %v454_v45, %v453_v44 }
 0x1da   :  { %392 = vst [vmem:[%s649_s4 + $0x10] sm:$0xff] %v368_v46  ;;  %v371_v48 = vadd.f32 %v455_v47, %v411_v33 }
 0x1dc   :  { %393 = vst [vmem:[%s649_s4 + $0x18] sm:$0xff] %v371_v48  ;;  %v456_v49 = vpop.f32.mrb[4].mxu1 }
 0x1dd   :  { %v457_v50 = vpop.f32.mrb[5].mxu1 }
 0x1de   :  { %v458_v51 = vadd.f32 %v457_v50, %v456_v49  ;;  %v459_v52 = vpop.f32.mrb[6].mxu1 }
 0x1df   :  { %v460_v53 = vpop.f32.mrb[7].mxu1 }
 0x1e0   :  { %v376_v54 = vadd.f32 %v458_v51, %v411_v33  ;;  %v461_v55 = vadd.f32 %v460_v53, %v459_v52 }
 0x1e2   :  { %394 = vst [vmem:[%s649_s4 + $0x20] sm:$0xff] %v376_v54  ;;  %v379_v56 = vadd.f32 %v461_v55, %v411_v33 }
 0x1e4   :  { %395 = vst [vmem:[%s649_s4 + $0x28] sm:$0xff] %v379_v56  ;;  %v462_v57 = vpop.f32.mrb[8].mxu1 }
 0x1e5   :  { %v463_v58 = vpop.f32.mrb[9].mxu1 }
 0x1e6   :  { %v464_v59 = vadd.f32 %v463_v58, %v462_v57  ;;  %v465_v60 = vpop.f32.mrb[10].mxu1 }
 0x1e7   :  { %v466_v61 = vpop.f32.mrb[11].mxu1 }
 0x1e8   :  { %v384_v62 = vadd.f32 %v464_v59, %v411_v33  ;;  %v467_v63 = vadd.f32 %v466_v61, %v465_v60 }
 0x1ea   :  { %396 = vst [vmem:[%s649_s4 + $0x30] sm:$0xff] %v384_v62  ;;  %v387_v0 = vadd.f32 %v467_v63, %v411_v33 }
 0x1ec   :  { %397 = vst [vmem:[%s649_s4 + $0x38] sm:$0xff] %v387_v0 }
 0x1ed   :  { %402 = vsyncpa [#allocation3], 1 }

</bundles_post_ra>
